<compile_context>
chip_gen: v5e
topology: v5e:2x2
jax: 0.10.0
libtpu: 0.0.40
codegen_flags: <defaults>
</compile_context>

<pallas_src>
import jax
import jax.numpy as jnp
from jax.experimental import pallas as pl
from jax.experimental.pallas import tpu as pltpu


def _round_up(x: int, m: int) -> int:
    return ((x + m - 1) // m) * m


def _cdiv(a: int, b: int) -> int:
    return -(-a // b)


def _choose_tile(total: int, max_tile: int, align: int) -> int:
    """Largest near-tight tile <= max_tile, aligned to `align` (minimizes padding)."""
    max_tile = max(align, _round_up(max_tile, align))
    if total <= max_tile:
        return _round_up(total, align)
    nblocks = _cdiv(total, max_tile)
    return _round_up(_cdiv(total, nblocks), align)


def _stable_softplus(x):
    # log1p(exp(x)) computed stably:  max(x, 0) + log(1 + exp(-|x|))
    return jnp.maximum(x, 0.0) + jnp.log(1.0 + jnp.exp(-jnp.abs(x)))


def bayesian_linear_kernel(
    x_ref,                              # [TB, F_in]   f32 or bf16 (batch tile)
    w_mu_ref, w_rho_ref, eps_w_ref,     # [F_in, TN]   f32 (N tile)
    b_ref,                              # [3,    TN]   f32 (mu / rho / eps rows)
    out_ref,                            # [TB,   TN]   f32
    w_sm,                               # VMEM [F_in, TN] dot_dtype scratch
    b_sm,                               # VMEM [1,    TN] f32 scratch
):
    # ---- sample W / b once per output-feature tile (first batch step); the
    # scratch persists across the sequential ("arbitrary") inner batch axis,
    # so the EUP transcendentals are not replayed per batch tile. ----
    @pl.when(pl.program_id(1) == 0)
    def _sample():
        sigma_w = _stable_softplus(w_rho_ref[...])
        w_sm[...] = (w_mu_ref[...] + sigma_w * eps_w_ref[...]).astype(w_sm.dtype)
        b = b_ref[...]
        b_sm[...] = b[0:1, :] + _stable_softplus(b[1:2, :]) * b[2:3, :]

    # ---- steady state: MXU matmul (operands in dot_dtype, f32 accumulate) ----
    acc = jnp.dot(x_ref[...].astype(w_sm.dtype), w_sm[...],
                  preferred_element_type=jnp.float32)
    out_ref[...] = (acc + b_sm[...]).astype(out_ref.dtype)


def bayesian_linear_forward(
    x, weight_mu, weight_rho, bias_mu, bias_rho, eps_w, eps_b,
    *, dot_dtype=jnp.bfloat16, batch_tile=512, n_tile=512,
):
    """x: [B, F_in].  weight_*: [F_in, F_out].  bias_*: [F_out].

    Returns [B, F_out] f32 = x @ (mu + softplus(rho)*eps_w) + (bias sampled likewise).
    """
    B, F_in = x.shape
    F_out = weight_mu.shape[1]

    dot_dtype = jnp.dtype(dot_dtype)
    f32 = 4

    # Pre-cast x to the (narrow) MXU operand dtype in the wrapper: halves the
    # x HBM stream + per-tile x VMEM when dot_dtype=bf16.
    precast_x = dot_dtype.itemsize < 4
    x_dtype = dot_dtype if precast_x else jnp.dtype(jnp.float32)
    row_align = 32 // x_dtype.itemsize          # 8 rows (f32) / 16 rows (bf16)

    # ---- right-sized, aligned tiles (minimize padding waste) ----
    tb = _choose_tile(B, batch_tile, row_align)
    b_blocks = _cdiv(B, tb)
    b_pad = b_blocks * tb

    n_pad0 = _round_up(F_out, 128)              # lane-dense output columns
    tn = _choose_tile(n_pad0, n_tile, 128)
    n_blocks = _cdiv(n_pad0, tn)
    n_pad = n_blocks * tn

    # ---- pad / pack operands ----
    x_p = jnp.pad(x.astype(x_dtype), ((0, b_pad - B), (0, 0)))

    def pad_w(a):  # [F_in, F_out] -> [F_in, n_pad] f32
        return jnp.pad(a.astype(jnp.float32), ((0, 0), (0, n_pad - F_out)))

    # Pack the three bias vectors into one [3, n_pad] input (single block/DMA).
    bias_pack = jnp.stack([bias_mu, bias_rho, eps_b]).astype(jnp.float32)
    bias_pack = jnp.pad(bias_pack, ((0, 0), (0, n_pad - F_out)))

    args = (x_p, pad_w(weight_mu), pad_w(weight_rho), pad_w(eps_w), bias_pack)

    # ---- specs: single-buffer any input whose block never changes ----
    single = dict(pipeline_mode=pl.Buffered(1))
    w_pm = single if n_blocks == 1 else {}      # constant (0,0) iff one N tile
    x_pm = single if b_blocks == 1 else {}      # constant (0,0) iff one batch tile

    x_spec = pl.BlockSpec((tb, F_in), lambda j, i: (i, 0), **x_pm)
    w_spec = pl.BlockSpec((F_in, tn), lambda j, i: (0, j), **w_pm)
    b_spec = pl.BlockSpec((3, tn), lambda j, i: (0, j), **w_pm)
    out_spec = pl.BlockSpec((tb, tn), lambda j, i: (i, j))

    grid = (n_blocks, b_blocks)                 # N outer (parallel), batch inner

    # ---- explicit VMEM budget from the actual footprint ----
    w_buf = 1 if n_blocks == 1 else 2
    x_buf = 1 if b_blocks == 1 else 2
    vmem_needed = (
        x_buf * tb * F_in * x_dtype.itemsize        # x blocks
        + w_buf * 3 * F_in * tn * f32               # w mu/rho/eps blocks
        + w_buf * 8 * tn * f32                      # packed-bias block (8-sublane pad)
        + 2 * tb * tn * f32                         # out blocks (double-buffered)
        + F_in * tn * dot_dtype.itemsize            # sampled-W scratch
        + 8 * tn * f32                              # sampled-b scratch
    )
    try:
        vmem_cap = int(pltpu.get_tpu_info().vmem_capacity_bytes * 0.85)
    except Exception:
        vmem_cap = 56 * 1024 * 1024                 # safe under v7x's 64 MiB/TC
    vmem_limit = max(16 * 1024 * 1024,
                     min(int(vmem_needed * 1.25) + (2 << 20), vmem_cap))

    cost = pl.CostEstimate(
        flops=2 * b_pad * F_in * n_pad + 3 * (F_in * n_pad + n_pad),
        transcendentals=2 * (F_in * n_pad + n_pad),
        bytes_accessed=(b_pad * F_in * x_dtype.itemsize
                        + 3 * F_in * n_pad * f32
                        + 3 * n_pad * f32
                        + b_pad * n_pad * f32),
    )

    out = pl.pallas_call(
        bayesian_linear_kernel,
        out_shape=jax.ShapeDtypeStruct((b_pad, n_pad), jnp.float32),
        grid_spec=pltpu.PrefetchScalarGridSpec(
            num_scalar_prefetch=0,
            grid=grid,
            in_specs=[x_spec, w_spec, w_spec, w_spec, b_spec],
            out_specs=out_spec,
            scratch_shapes=[
                pltpu.VMEM((F_in, tn), dot_dtype),  # sampled W (per N tile)
                pltpu.VMEM((1, tn), jnp.float32),   # sampled b (per N tile)
            ],
        ),
        compiler_params=pltpu.CompilerParams(
            # N axis is independent work (per-N-tile sampling into per-core
            # scratch) -> "parallel" for v7x megacore.  The inner batch axis
            # carries the sampled-weight scratch -> must stay "arbitrary".
            dimension_semantics=("parallel", "arbitrary"),
            vmem_limit_bytes=vmem_limit,
        ),
        cost_estimate=cost,
    )(*args)

    return out[:B, :F_out]


# ----------------------------- reference & demo ------------------------------

def reference_forward(x, weight_mu, weight_rho, bias_mu, bias_rho, eps_w, eps_b):
    """Pure-JAX f32 mirror of BayesianLinear.forward."""
    w = weight_mu + jnp.log1p(jnp.exp(weight_rho)) * eps_w
    b = bias_mu + jnp.log1p(jnp.exp(bias_rho)) * eps_b
    return x @ w + b


def _make_inputs(key, B, F_in, F_out):
    k_x, k_wm, k_wr, k_bm, k_br, k_ew, k_eb = jax.random.split(key, 7)
    x = jax.random.normal(k_x, (B, F_in), jnp.float32)
    # Init matching BayesianLinear.__init__: mu ~ U(-1,1), rho ~ U(0,1).
    weight_mu = jax.random.uniform(k_wm, (F_in, F_out), minval=-1.0, maxval=1.0)
    weight_rho = jax.random.uniform(k_wr, (F_in, F_out), minval=0.0, maxval=1.0)
    bias_mu = jax.random.uniform(k_bm, (F_out,), minval=-1.0, maxval=1.0)
    bias_rho = jax.random.uniform(k_br, (F_out,), minval=0.0, maxval=1.0)
    # Standard-normal noise for the reparametrization trick (torch .normal_()).
    eps_w = jax.random.normal(k_ew, (F_in, F_out), jnp.float32)
    eps_b = jax.random.normal(k_eb, (F_out,), jnp.float32)
    return x, weight_mu, weight_rho, bias_mu, bias_rho, eps_w, eps_b


if __name__ == "__main__":
    key = jax.random.PRNGKey(0)
    k1, k2 = jax.random.split(key)

    # ---- test 1: small shapes (batch=12, in=16, out=24) -> single-tile grid,
    # exercises the Buffered(1) constant-block path and lane/batch padding. ----
    B, F_IN, F_OUT = 12, 16, 24
    args1 = _make_inputs(k1, B, F_IN, F_OUT)
    ref1 = reference_forward(*args1)

    out1_f32 = jax.block_until_ready(
        bayesian_linear_forward(*args1, dot_dtype=jnp.float32))
    assert out1_f32.shape == (B, F_OUT)
    assert jnp.allclose(out1_f32, ref1, atol=1e-4, rtol=1e-4), "f32 kernel mismatch (t1)"

    out1_bf16 = jax.block_until_ready(
        bayesian_linear_forward(*args1, dot_dtype=jnp.bfloat16))
    assert out1_bf16.shape == (B, F_OUT)
    assert jnp.allclose(out1_bf16, ref1, atol=1e-1, rtol=5e-2), "bf16 kernel mismatch (t1)"

    # ---- test 2: batch=40, in=32, out=200 with small tiles -> multi-tile
    # (parallel N axis x arbitrary batch axis), per-N-tile resampling path. ----
    B2, F_IN2, F_OUT2 = 40, 32, 200
    args2 = _make_inputs(k2, B2, F_IN2, F_OUT2)
    ref2 = reference_forward(*args2)

    out2_f32 = jax.block_until_ready(
        bayesian_linear_forward(*args2, dot_dtype=jnp.float32,
                                batch_tile=16, n_tile=128))
    assert out2_f32.shape == (B2, F_OUT2)
    assert jnp.allclose(out2_f32, ref2, atol=1e-3, rtol=1e-3), "f32 kernel mismatch (t2)"

    out2_bf16 = jax.block_until_ready(
        bayesian_linear_forward(*args2, dot_dtype=jnp.bfloat16,
                                batch_tile=16, n_tile=128))
    assert out2_bf16.shape == (B2, F_OUT2)
    assert jnp.allclose(out2_bf16, ref2, atol=1e-1, rtol=5e-2), "bf16 kernel mismatch (t2)"

    print("KERNEL_OK")
</pallas_src>

<mosaic_0001>
module attributes {stable_mosaic.version = 11 : i64} {
  func.func @bayesian_linear_kernel(%arg0: i32, %arg1: i32, %arg2: memref<16x16xf32, #tpu.memory_space<vmem>>, %arg3: memref<16x128xf32, #tpu.memory_space<vmem>>, %arg4: memref<16x128xf32, #tpu.memory_space<vmem>>, %arg5: memref<16x128xf32, #tpu.memory_space<vmem>>, %arg6: memref<3x128xf32, #tpu.memory_space<vmem>>, %arg7: memref<16x128xf32, #tpu.memory_space<vmem>>, %arg8: memref<16x128xf32, #tpu.memory_space<vmem>>, %arg9: memref<1x128xf32, #tpu.memory_space<vmem>>) attributes {dimension_semantics = [#tpu.dimension_semantics<parallel>, #tpu.dimension_semantics<arbitrary>], iteration_bounds = array<i64: 1, 1>, scalar_prefetch = 0 : i64, scratch_operands = 2 : i64, tpu.core_type = #tpu.core_type<tc>, window_params = [{pipeline_mode = #tpu.pipeline_mode<synchronous>, transform_indices = @transform_0, window_bounds = array<i64: 16, 16>}, {pipeline_mode = #tpu.pipeline_mode<synchronous>, transform_indices = @transform_1, window_bounds = array<i64: 16, 128>}, {pipeline_mode = #tpu.pipeline_mode<synchronous>, transform_indices = @transform_2, window_bounds = array<i64: 16, 128>}, {pipeline_mode = #tpu.pipeline_mode<synchronous>, transform_indices = @transform_3, window_bounds = array<i64: 16, 128>}, {pipeline_mode = #tpu.pipeline_mode<synchronous>, transform_indices = @transform_4, window_bounds = array<i64: 3, 128>}, {transform_indices = @transform_5, window_bounds = array<i64: 16, 128>}]} {
    %c0_i32 = arith.constant 0 : i32
    %0 = arith.cmpi eq, %arg1, %c0_i32 : i32
    %1 = arith.extui %0 : i1 to i32
    %c0_i32_0 = arith.constant 0 : i32
    %2 = arith.cmpi ne, %1, %c0_i32_0 : i32
    scf.if %2 {
      %c0_8 = arith.constant 0 : index
      %c0_9 = arith.constant 0 : index
      %10 = vector.load %arg4[%c0_8, %c0_9] : memref<16x128xf32, #tpu.memory_space<vmem>>, vector<16x128xf32>
      %cst_10 = arith.constant 0.000000e+00 : f32
      %11 = vector.broadcast %cst_10 : f32 to vector<16x128xf32>
      %12 = arith.maximumf %10, %11 : vector<16x128xf32>
      %13 = math.absf %10 : vector<16x128xf32>
      %cst_11 = arith.constant 0.000000e+00 : f32
      %14 = vector.broadcast %cst_11 : f32 to vector<16x128xf32>
      %15 = arith.subf %14, %13 : vector<16x128xf32>
      %16 = math.exp %15 : vector<16x128xf32>
      %cst_12 = arith.constant 1.000000e+00 : f32
      %17 = vector.broadcast %cst_12 : f32 to vector<16x128xf32>
      %18 = arith.addf %17, %16 : vector<16x128xf32>
      %19 = math.log %18 : vector<16x128xf32>
      %20 = arith.addf %12, %19 : vector<16x128xf32>
      %c0_13 = arith.constant 0 : index
      %c0_14 = arith.constant 0 : index
      %21 = vector.load %arg3[%c0_13, %c0_14] : memref<16x128xf32, #tpu.memory_space<vmem>>, vector<16x128xf32>
      %c0_15 = arith.constant 0 : index
      %c0_16 = arith.constant 0 : index
      %22 = vector.load %arg5[%c0_15, %c0_16] : memref<16x128xf32, #tpu.memory_space<vmem>>, vector<16x128xf32>
      %23 = arith.mulf %20, %22 : vector<16x128xf32>
      %24 = arith.addf %21, %23 : vector<16x128xf32>
      %c0_17 = arith.constant 0 : index
      %c0_18 = arith.constant 0 : index
      %25 = vector.load %arg8[%c0_17, %c0_18] : memref<16x128xf32, #tpu.memory_space<vmem>>, vector<16x128xf32>
      tpu.vector_store %arg8[%c0_17, %c0_18], %24 {strides = array<i32>} : memref<16x128xf32, #tpu.memory_space<vmem>>, vector<16x128xf32>,
      %c0_19 = arith.constant 0 : index
      %c0_20 = arith.constant 0 : index
      %26 = vector.load %arg6[%c0_19, %c0_20] : memref<3x128xf32, #tpu.memory_space<vmem>>, vector<3x128xf32>
      %27 = vector.extract_strided_slice %26 {offsets = [0, 0], sizes = [1, 128], strides = [1, 1]} : vector<3x128xf32> to vector<1x128xf32>
      %28 = vector.extract_strided_slice %26 {offsets = [1, 0], sizes = [1, 128], strides = [1, 1]} : vector<3x128xf32> to vector<1x128xf32>
      %cst_21 = arith.constant 0.000000e+00 : f32
      %29 = vector.broadcast %cst_21 : f32 to vector<1x128xf32>
      %30 = arith.maximumf %28, %29 : vector<1x128xf32>
      %31 = math.absf %28 : vector<1x128xf32>
      %cst_22 = arith.constant 0.000000e+00 : f32
      %32 = vector.broadcast %cst_22 : f32 to vector<1x128xf32>
      %33 = arith.subf %32, %31 : vector<1x128xf32>
      %34 = math.exp %33 : vector<1x128xf32>
      %cst_23 = arith.constant 1.000000e+00 : f32
      %35 = vector.broadcast %cst_23 : f32 to vector<1x128xf32>
      %36 = arith.addf %35, %34 : vector<1x128xf32>
      %37 = math.log %36 : vector<1x128xf32>
      %38 = arith.addf %30, %37 : vector<1x128xf32>
      %39 = vector.extract_strided_slice %26 {offsets = [2, 0], sizes = [1, 128], strides = [1, 1]} : vector<3x128xf32> to vector<1x128xf32>
      %40 = arith.mulf %38, %39 : vector<1x128xf32>
      %41 = arith.addf %27, %40 : vector<1x128xf32>
      %c0_24 = arith.constant 0 : index
      %c0_25 = arith.constant 0 : index
      %42 = vector.load %arg9[%c0_24, %c0_25] : memref<1x128xf32, #tpu.memory_space<vmem>>, vector<1x128xf32>
      tpu.vector_store %arg9[%c0_24, %c0_25], %41 {strides = array<i32>} : memref<1x128xf32, #tpu.memory_space<vmem>>, vector<1x128xf32>,
    } else {
    }
    %c0 = arith.constant 0 : index
    %c0_1 = arith.constant 0 : index
    %3 = vector.load %arg2[%c0, %c0_1] : memref<16x16xf32, #tpu.memory_space<vmem>>, vector<16x16xf32>
    %c0_2 = arith.constant 0 : index
    %c0_3 = arith.constant 0 : index
    %4 = vector.load %arg8[%c0_2, %c0_3] : memref<16x128xf32, #tpu.memory_space<vmem>>, vector<16x128xf32>
    %cst = arith.constant dense<0.000000e+00> : vector<16x128xf32>
    %5 = tpu.matmul %3, %4, %cst {dimension_numbers = #tpu.dot_dimension_numbers<[1], [0], [0], [1], [0, 0, 1, 1], [], []>} : vector<16x16xf32>, vector<16x128xf32>, vector<16x128xf32> -> vector<16x128xf32>
    %c0_4 = arith.constant 0 : index
    %c0_5 = arith.constant 0 : index
    %6 = vector.load %arg9[%c0_4, %c0_5] : memref<1x128xf32, #tpu.memory_space<vmem>>, vector<1x128xf32>
    %7 = vector.broadcast %6 : vector<1x128xf32> to vector<16x128xf32>
    %8 = arith.addf %5, %7 : vector<16x128xf32>
    %c0_6 = arith.constant 0 : index
    %c0_7 = arith.constant 0 : index
    %9 = vector.load %arg7[%c0_6, %c0_7] : memref<16x128xf32, #tpu.memory_space<vmem>>, vector<16x128xf32>
    tpu.vector_store %arg7[%c0_6, %c0_7], %8 {strides = array<i32>} : memref<16x128xf32, #tpu.memory_space<vmem>>, vector<16x128xf32>,
    return
  }
  func.func @transform_0(%arg0: i32, %arg1: i32) -> (i32, i32) {
    %c0_i32 = arith.constant 0 : i32
    %c0_i32_0 = arith.constant 0 : i32
    return %arg1, %c0_i32 : i32, i32
  }
  func.func @transform_1(%arg0: i32, %arg1: i32) -> (i32, i32) {
    %c0_i32 = arith.constant 0 : i32
    %c0_i32_0 = arith.constant 0 : i32
    return %c0_i32, %arg0 : i32, i32
  }
  func.func @transform_2(%arg0: i32, %arg1: i32) -> (i32, i32) {
    %c0_i32 = arith.constant 0 : i32
    %c0_i32_0 = arith.constant 0 : i32
    return %c0_i32, %arg0 : i32, i32
  }
  func.func @transform_3(%arg0: i32, %arg1: i32) -> (i32, i32) {
    %c0_i32 = arith.constant 0 : i32
    %c0_i32_0 = arith.constant 0 : i32
    return %c0_i32, %arg0 : i32, i32
  }
  func.func @transform_4(%arg0: i32, %arg1: i32) -> (i32, i32) {
    %c0_i32 = arith.constant 0 : i32
    %c0_i32_0 = arith.constant 0 : i32
    return %c0_i32, %arg0 : i32, i32
  }
  func.func @transform_5(%arg0: i32, %arg1: i32) -> (i32, i32) {
    %c0_i32 = arith.constant 0 : i32
    return %arg1, %arg0 : i32, i32
  }
}

</mosaic_0001>

<bundles_post_ra>
// kernel: tpu_custom_call.1
= control target key start
LH: loop header
LB: loop body
LE: loop exit
PB: predicated region body
PF: predicated region fallthrough
CT: control target
= control target key end

     0   :  { %10 = vsyncpa [#allocation5], 0  ;;  %s459_s0 = inlined_call_operand.hbm [shape: f32[16,16], index: 0, kind: input, shape index: {}]   ;;  %s460_s1 = inlined_call_operand.hbm [shape: f32[16,128], index: 1, kind: input, shape index: {}]   ;;  %s461_s2 = inlined_call_operand.hbm [shape: f32[16,128], index: 2, kind: input, shape index: {}]   ;;  %s462_s3 = inlined_call_operand.hbm [shape: f32[16,128], index: 3, kind: input, shape index: {}]   ;;  %s463_s4 = inlined_call_operand.hbm [shape: f32[3,128], index: 4, kind: input, shape index: {}]   ;;  %s464_s5 = inlined_call_operand.hbm [shape: f32[16,128], index: 5, kind: output, shape index: {}]  }
   0x1   :  { %11 = vsyncpa [#allocation8], 0 }
   0x2   :  { %12 = vsyncpa [#allocation11], 0 }
   0x3   :  { %13 = vsyncpa [#allocation6], 0  ;;  %s31_s20 = sshll.u32 %s460_s1, 4  ;;  %s388_s21 = smov [#allocation7]   ;;  %s32_s20 = int_to_ptr.hbm [resolvable:$true] %s31_s20 }
   0x4   :  { %s33_s22 = sshll.u32 %s388_s21, 4  ;;  %s57_s25 = sshll.u32 %s462_s3, 4  ;;  %s34_s22 = int_to_ptr.vmem [resolvable:$true] %s33_s22  ;;  %s58_s25 = int_to_ptr.hbm [resolvable:$true] %s57_s25 }
   0x5   :  { %s389_s26 = smov 128   ;;  %s390_s27 = smov 8  }
   0x6   :  { %39 = dma.hbm_to_vmem [thread:$0]  %s32_s20, 256, %s34_s22, [#allocation8], %s389_s26, %s389_s26, %s390_s27  }
   0x7   :  { %s391_s28 = smov [#allocation10]   ;;  %s18_s1 = sshll.u32 %s459_s0, 4  ;;  %s19_s1 = int_to_ptr.hbm [resolvable:$true] %s18_s1 }
   0x8   :  { %s59_s29 = sshll.u32 %s391_s28, 4  ;;  %s44_s8 = sshll.u32 %s461_s2, 4  ;;  %s60_s29 = int_to_ptr.vmem [resolvable:$true] %s59_s29  ;;  %s45_s8 = int_to_ptr.hbm [resolvable:$true] %s44_s8 }
   0x9   :  { %65 = dma.hbm_to_vmem [thread:$0]  %s58_s25, 256, %s60_s29, [#allocation11], %s389_s26, %s389_s26, %s390_s27  }
   0xa   :  { %s392_s9 = smov [#allocation4]   ;;  %s393_s11 = smov [#allocation9]  }
   0xb   :  { %s20_s10 = sshll.u32 %s392_s9, 4  ;;  %s46_s0 = sshll.u32 %s393_s11, 4  ;;  %s21_s10 = int_to_ptr.vmem [resolvable:$true] %s20_s10  ;;  %s47_s0 = int_to_ptr.vmem [resolvable:$true] %s46_s0 }
   0xc   :  { %26 = dma.hbm_to_vmem [thread:$0]  %s19_s1, 256, %s21_s10, [#allocation5], %s389_s26, %s389_s26, %s390_s27  }
   0xd   :  { %s71_s14 = sshll.u32 %s463_s4, 4  ;;  %s394_s2 = smov [#allocation12]   ;;  %s72_s14 = int_to_ptr.hbm [resolvable:$true] %s71_s14 }
   0xe   :  { %52 = dma.hbm_to_vmem [thread:$0]  %s45_s8, 256, %s47_s0, [#allocation8], %s389_s26, %s389_s26, %s390_s27  }
   0xf   :  { %s73_s15 = sshll.u32 %s394_s2, 4  ;;  %s74_s15 = int_to_ptr.vmem [resolvable:$true] %s73_s15 }
  0x10   :  { %76 = dma.hbm_to_vmem [thread:$0]  %s72_s14, 64, %s74_s15, [#allocation11]  }
  0x11   :  { %380 = dma.done.wait [#allocation5], 256  }
  0x12   :  { %381 = vsyncadd [#allocation5], 4294967040 }
  0x13   :  { %382 = dma.done.wait [#allocation8], 512  }
  0x14   :  { %383 = vsyncadd [#allocation8], 4294966784 }
  0x15   :  { %384 = dma.done.wait [#allocation11], 320  }
  0x16   :  { %385 = vsyncadd [#allocation11], 4294966976  ;;  %v102_v0 = vld [vmem:[#allocation9 + $0x8] sm:$0xff]  ;;  %v101_v2 = vld [vmem:[#allocation9] sm:$0xff]  ;;  %vm158_vm0 = vcmask 130048   ;;  %s395_s4 = smov [#allocation13]  }
  0x17   :  { %v106_v1 = vand.u32 2147483647, %v102_v0  ;;  %v105_v3 = vand.u32 2147483647, %v101_v2  ;;  %v131_v5 = vld [vmem:[#allocation12] sm:$0x7] }
  0x18   :  { %v133_v7 = vand.u32 2147483647, %v131_v5  ;;  %v104_v18 = vmax.f32 %v102_v0, 0.0  ;;  %v103_v20 = vmax.f32 %v101_v2, 0.0  ;;  %v124_v23 = vld [vmem:[#allocation10 + $0x8] sm:$0xff]  ;;  %v132_v25 = vmax.f32 %v131_v5, 0.0 }
  0x19   :  { %v108_v4 = vsub.f32 0.0, %v106_v1  ;;  %v107_v6 = vsub.f32 0.0, %v105_v3  ;;  %v123_v28 = vld [vmem:[#allocation10] sm:$0xff]  ;;  %v122_v29 = vld [vmem:[#allocation7 + $0x8] sm:$0xff]  ;;  %v142_v32 = vrot.slane %v131_v5, 1  ;;  %v150_v40 = vld [vmem:[#allocation4] sm:$0xff] }
  0x1a   :  { %v134_v10 = vsub.f32 0.0, %v133_v7  ;;  %v121_v34 = vld [vmem:[#allocation7] sm:$0xff]  ;;  %v151_v41 = vld [vmem:[#allocation4 + $0x8] sm:$0xff]  ;;  %s194_s16 = sshll.u32 %s395_s4, 4  ;;  %s196_s19 = sshll.u32 %s464_s5, 4  ;;  %s195_s16 = int_to_ptr.vmem [resolvable:$true] %s194_s16  ;;  %s197_s19 = int_to_ptr.hbm [resolvable:$true] %s196_s19 }
  0x1b   :  { %v111_v8 = vmul.f32 1.442695, %v108_v4  ;;  %v109_v9 = vmul.f32 1.442695, %v107_v6 }
  0x1c   :  { %v135_v11 = vmul.f32 1.442695, %v134_v10 }
  0x1d   :  { %224 = vpow2.f32 %v111_v8 }
  0x1e   :  { %226 = vpow2.f32 %v109_v9 }
  0x1f   :  { %228 = vpow2.f32 %v135_v11 }
  0x23   :  { %v225_v12 = vpop.eup %224 }
  0x24   :  { %v227_v13 = vpop.eup %226  ;;  %v114_v14 = vadd.f32 1.0, %v225_v12 }
  0x25   :  { %v113_v15 = vadd.f32 1.0, %v227_v13  ;;  %v229_v16 = vpop.eup %228 }
  0x26   :  { %230 = vlog2.f32 %v114_v14  ;;  %v137_v17 = vadd.f32 1.0, %v229_v16 }
  0x27   :  { %232 = vlog2.f32 %v113_v15 }
  0x28   :  { %234 = vlog2.f32 %v137_v17 }
  0x2c   :  { %v231_v19 = vpop.eup %230 }
  0x2d   :  { %v233_v21 = vpop.eup %232  ;;  %v118_v22 = vmul.f32 0.6931472, %v231_v19 }
  0x2e   :  { %v116_v24 = vmul.f32 0.6931472, %v233_v21  ;;  %v235_v26 = vpop.eup %234 }
  0x2f   :  { %v120_v27 = vadd.f32 %v118_v22, %v104_v18  ;;  %v139_v31 = vmul.f32 0.6931472, %v235_v26 }
  0x30   :  { %v119_v30 = vadd.f32 %v116_v24, %v103_v20 }
  0x31   :  { %v126_v33 = vmul.f32 %v124_v23, %v120_v27  ;;  %v140_v36 = vadd.f32 %v139_v31, %v132_v25 }
  0x32   :  { %v125_v35 = vmul.f32 %v123_v28, %v119_v30 }
  0x33   :  { %v128_v37 = vadd.f32 %v126_v33, %v122_v29  ;;  %v144_v39 = vmul.f32 %v142_v32, %v140_v36 }
  0x34   :  { %v127_v38 = vadd.f32 %v125_v35, %v121_v34 }
  0x35   :  { %179 = vmatpush.msra.mxu0 %v128_v37  ;;  %213 = vmatpush.msra.mxu1 %v128_v37  ;;  %v146_v42 = vrot.slane %v144_v39, 1 }
  0x37   :  { %180 = vmatpush.msra.mxu0 %v127_v38  ;;  %214 = vmatpush.msra.mxu1 %v127_v38  ;;  %v148_v43 = vadd.f32 %v146_v42, %v131_v5 }
  0x38   :  { %211 = vmatmul.msk.f32.vlgmr.msra.gmra.mxu0 %vm158_vm0, %v150_v40  ;;  %212 = vmatmul.msk.f32.vlgmr.msra.gmra.mxu1 %vm158_vm0, %v151_v41 }
  0x39   :  { %149 = vst [vmem:[#allocation3] sm:$0x1] %v148_v43 }
  0x40   :  { %v223_v44 = vld [vmem:[#allocation3] ss:$0 sm:$0xff] }
  0xb5   :  { %v182_v45 = vpop.f32.mrf.mxu0  ;;  %v185_v46 = vpop.f32.mrf.mxu1 }
  0xb6   :  { %v183_v47 = vadd.f32 %v223_v44, %v182_v45  ;;  %v186_v48 = vadd.f32 %v223_v44, %v185_v46 }
  0xb8   :  { %188 = vst [vmem:[#allocation13] sm:$0xff] %v183_v47 }
  0xb9   :  { %189 = vst [vmem:[#allocation13 + $0x8] sm:$0xff] %v186_v48 }
  0xba   :  { %202 = dma.vmem_to_hbm [thread:$0]  %s195_s16, 256, %s197_s19, [#allocation6], %s389_s26, %s389_s26, %s390_s27  }
  0xbb   :  { %386 = dma.done.wait [#allocation6], 256  }
  0xbc   :  { %387 = vsyncadd [#allocation6], 4294967040 }
  0xbd   :  { %207 = vsyncpa [#allocation5], 1 }
  0xbe   :  { %208 = vsyncpa [#allocation8], 1 }
  0xbf   :  { %209 = vsyncpa [#allocation11], 1 }
  0xc0   :  { %210 = vsyncpa [#allocation6], 1 }

</bundles_post_ra>
